<compile_context>
chip_gen: v7x
topology: tpu7x:2x2x1
jax: 0.10.0
libtpu: 0.0.40
codegen_flags: <defaults>
</compile_context>

<pallas_src>
import jax
import jax.numpy as jnp
from jax.experimental import pallas as pl
from jax.experimental.pallas import tpu as pltpu

# ---- small shapes consistent with the module --------------------------------
NODE_NUM   = 10              # embedding table has NodeNum + 1 rows
VOCAB      = NODE_NUM + 1
IN_DIM     = 16
HIDDEN_DIM = [32, 16, 8]
OUT_DIM    = 4
B, N       = 2, 16
BN         = B * N
LANES      = 128             # lane-padded slab width


def _a8(n):                  # round rows up to a sublane multiple
    return -(-n // 8) * 8


# ---- packed-parameter slab row layout (8-row aligned sections) ---------------
EMB_ROWS_PAD = _a8(VOCAB)                      # 16 (rows >= VOCAB are zero)
EMB_R  = 0
W1_R   = EMB_R + EMB_ROWS_PAD                  # 16
B1_R   = W1_R + _a8(IN_DIM)                    # 32
W2_R   = B1_R + 8                              # 40
B2_R   = W2_R + _a8(HIDDEN_DIM[0])             # 72
W3_R   = B2_R + 8                              # 80
B3_R   = W3_R + _a8(HIDDEN_DIM[1])             # 96
FWC_R  = B3_R + 8                              # 104
FBC_R  = FWC_R + _a8(HIDDEN_DIM[2])            # 112
PAR_ROWS = FBC_R + 8                           # 120

# activation slab: [onehot | A_blk | mask_broadcast], each BN rows
ACT_ROWS = 3 * BN                              # 96

_LAYERS = (
    (W1_R, B1_R, IN_DIM, HIDDEN_DIM[0]),
    (W2_R, B2_R, HIDDEN_DIM[0], HIDDEN_DIM[1]),
    (W3_R, B3_R, HIDDEN_DIM[1], HIDDEN_DIM[2]),
)


# ---------------------------- Pallas kernel -----------------------------------
def _gcn_fused_kernel(act_ref, par_ref, out_ref):
    """Whole batch in one step: embedding -> 3 GCN layers -> max-pool -> FC -> relu."""
    # Static-slice unpacking of the two resident VMEM slabs (free views).
    onehot = act_ref[0:BN, 0:EMB_ROWS_PAD]            # (32, 16), lanes >= VOCAB are 0
    a_blk  = act_ref[BN:2 * BN, 0:BN]                 # (32, 32) block-diag symmetrized adj
    mask_b = act_ref[2 * BN:3 * BN, 0:HIDDEN_DIM[0]]  # (32, 32) mask, pre-broadcast once

    # Embedding lookup as a one-hot matmul (exact: padding rows of emb are 0).
    emb = par_ref[EMB_R:EMB_R + EMB_ROWS_PAD, 0:IN_DIM]        # (16, 16)
    h = jnp.dot(onehot, emb, preferred_element_type=jnp.float32)  # (32, IN_DIM)

    # Three GCN layers: block-diag neighbor sum, stacked Linear, node mask.
    for w_r, b_r, f_in, f_out in _LAYERS:
        w = par_ref[w_r:w_r + f_in, 0:f_out]                   # (f_in, f_out)
        b = par_ref[b_r:b_r + 1, 0:f_out]                      # (1, f_out)
        agg = jnp.dot(a_blk, h, preferred_element_type=jnp.float32)   # (32, f_in)
        h = jnp.dot(agg, w, preferred_element_type=jnp.float32) + b   # (32, f_out)
        h = h * mask_b[:, 0:f_out]     # no inter-layer activation in the module

    # torch.max(x, dim=1)[0] (masked/zeroed rows participate, as in torch).
    pooled = jnp.max(h.reshape(B, N, HIDDEN_DIM[-1]), axis=1)  # (B, h3)

    # Fused FC head (fc1/fc2 pre-multiplied at init; dropout = identity at eval).
    fwc = par_ref[FWC_R:FWC_R + HIDDEN_DIM[-1], 0:OUT_DIM]     # (h3, out)
    fbc = par_ref[FBC_R:FBC_R + 1, 0:OUT_DIM]                  # (1, out)
    fc = jnp.dot(pooled, fwc, preferred_element_type=jnp.float32) + fbc
    out_ref[...] = jnp.maximum(fc, 0.0)                        # final F.relu


# ------------------------------- wrapper --------------------------------------
def gcn_forward(node_ids, adj, mask, par_slab):
    """Single XLA prep fusion builds the activation slab; one pallas_call does the rest."""
    # numpy_to_graph(adj.T) -> undirected nx graph -> bidirected dgl graph;
    # copy_src ignores edge weights => aggregation = symmetrized binary adjacency.
    # dgl.batch => block-diagonal adjacency over the flat (B*N) node set.
    # TODO(synk): the (B,16,16) minor-dim transpose has no robust in-kernel
    # Mosaic lowering at this odd small shape, so symmetrization stays in XLA.
    a_sym = jnp.logical_or(adj != 0, jnp.swapaxes(adj, 1, 2) != 0).astype(jnp.float32)
    eye_b = jnp.eye(B, dtype=jnp.float32)
    a_blk = jnp.einsum('bc,bij->bicj', eye_b, a_sym).reshape(BN, BN)   # block-diag

    ids = node_ids.reshape(BN).astype(jnp.int32)
    onehot = (ids[:, None] == jnp.arange(VOCAB, dtype=jnp.int32)[None, :]
              ).astype(jnp.float32)                                    # (BN, VOCAB)

    if mask.ndim == 2:
        mask = mask[:, :, None]
    mask_b = jnp.broadcast_to(mask.astype(jnp.float32).reshape(BN, 1),
                              (BN, HIDDEN_DIM[0]))                     # hoisted broadcast

    act = jnp.zeros((ACT_ROWS, LANES), jnp.float32)
    act = act.at[0:BN, 0:VOCAB].set(onehot)
    act = act.at[BN:2 * BN, 0:BN].set(a_blk)
    act = act.at[2 * BN:3 * BN, 0:HIDDEN_DIM[0]].set(mask_b)

    vmem = lambda: pl.BlockSpec(memory_space=pltpu.MemorySpace.VMEM)

    out = pl.pallas_call(
        _gcn_fused_kernel,
        out_shape=jax.ShapeDtypeStruct((B, OUT_DIM), jnp.float32),
        in_specs=[vmem(), vmem()],               # two slab DMAs, fully VMEM-resident
        out_specs=vmem(),
        cost_estimate=pl.CostEstimate(
            flops=220_000,
            transcendentals=0,
            bytes_accessed=4 * (ACT_ROWS * LANES + PAR_ROWS * LANES + B * OUT_DIM)),
    )(act, par_slab)

    return out   # .squeeze() in torch is a no-op for B > 1


# --------------------------- parameter init -----------------------------------
def init_params(key):
    """Init like torch defaults, fuse the FC head, and pack into one f32 slab."""
    ks = jax.random.split(key, 6)

    def linear(k, fan_in, fan_out):
        # like torch nn.Linear default init; stored as (in, out) = weight.T
        bound = 1.0 / (fan_in ** 0.5)
        kw, kb = jax.random.split(k)
        w = jax.random.uniform(kw, (fan_in, fan_out), jnp.float32, -bound, bound)
        b = jax.random.uniform(kb, (1, fan_out), jnp.float32, -bound, bound)
        return w, b

    emb = jax.random.normal(ks[0], (VOCAB, IN_DIM), jnp.float32)
    w1, b1 = linear(ks[1], IN_DIM, HIDDEN_DIM[0])
    w2, b2 = linear(ks[2], HIDDEN_DIM[0], HIDDEN_DIM[1])
    w3, b3 = linear(ks[3], HIDDEN_DIM[1], HIDDEN_DIM[2])
    fw1, fb1 = linear(ks[4], HIDDEN_DIM[2], HIDDEN_DIM[2])
    fw2, fb2 = linear(ks[5], HIDDEN_DIM[2], OUT_DIM)

    # Algebraic FC fusion (valid at eval: dropout = identity, relu only after fc2).
    fwc = fw1 @ fw2                       # (h3, out)
    fbc = fb1 @ fw2 + fb2                 # (1, out)

    slab = jnp.zeros((PAR_ROWS, LANES), jnp.float32)
    slab = slab.at[EMB_R:EMB_R + VOCAB, 0:IN_DIM].set(emb)
    slab = slab.at[W1_R:W1_R + IN_DIM, 0:HIDDEN_DIM[0]].set(w1)
    slab = slab.at[B1_R:B1_R + 1, 0:HIDDEN_DIM[0]].set(b1)
    slab = slab.at[W2_R:W2_R + HIDDEN_DIM[0], 0:HIDDEN_DIM[1]].set(w2)
    slab = slab.at[B2_R:B2_R + 1, 0:HIDDEN_DIM[1]].set(b2)
    slab = slab.at[W3_R:W3_R + HIDDEN_DIM[1], 0:HIDDEN_DIM[2]].set(w3)
    slab = slab.at[B3_R:B3_R + 1, 0:HIDDEN_DIM[2]].set(b3)
    slab = slab.at[FWC_R:FWC_R + HIDDEN_DIM[2], 0:OUT_DIM].set(fwc)
    slab = slab.at[FBC_R:FBC_R + 1, 0:OUT_DIM].set(fbc)
    return slab


if __name__ == "__main__":
    key = jax.random.PRNGKey(0)
    k_ids, k_adj, k_mask, k_par = jax.random.split(key, 4)

    par_slab = init_params(k_par)

    node_ids = jax.random.randint(k_ids, (B, N), 0, VOCAB, jnp.int32)          # data[0]
    adj = jax.random.bernoulli(k_adj, 0.3, (B, N, N)).astype(jnp.float32)      # data[1]
    mask = jax.random.bernoulli(k_mask, 0.8, (B, N)).astype(jnp.float32)       # data[2]

    fwd = jax.jit(gcn_forward)
    out = fwd(node_ids, adj, mask, par_slab)
    jax.block_until_ready(out)
    assert out.shape == (B, OUT_DIM)
    print("KERNEL_OK")
</pallas_src>

<mosaic_0001>
module attributes {stable_mosaic.version = 11 : i64} {
  func.func @_gcn_fused_kernel(%arg0: memref<96x128xf32, #tpu.memory_space<vmem>>, %arg1: memref<120x128xf32, #tpu.memory_space<vmem>>, %arg2: memref<2x4xf32, #tpu.memory_space<vmem>>) attributes {dimension_semantics = [], scalar_prefetch = 0 : i64, scratch_operands = 0 : i64, tpu.core_type = #tpu.core_type<tc>} {
    %c0 = arith.constant 0 : index
    %c0_0 = arith.constant 0 : index
    %0 = vector.load %arg0[%c0, %c0_0] : memref<96x128xf32, #tpu.memory_space<vmem>>, vector<32x16xf32>
    %c32 = arith.constant 32 : index
    %c0_1 = arith.constant 0 : index
    %1 = vector.load %arg0[%c32, %c0_1] : memref<96x128xf32, #tpu.memory_space<vmem>>, vector<32x32xf32>
    %c64 = arith.constant 64 : index
    %c0_2 = arith.constant 0 : index
    %2 = vector.load %arg0[%c64, %c0_2] : memref<96x128xf32, #tpu.memory_space<vmem>>, vector<32x32xf32>
    %c0_3 = arith.constant 0 : index
    %c0_4 = arith.constant 0 : index
    %3 = vector.load %arg1[%c0_3, %c0_4] : memref<120x128xf32, #tpu.memory_space<vmem>>, vector<16x16xf32>
    %cst = arith.constant dense<0.000000e+00> : vector<32x16xf32>
    %4 = tpu.matmul %0, %3, %cst {dimension_numbers = #tpu.dot_dimension_numbers<[1], [0], [0], [1], [0, 0, 1, 1], [], []>} : vector<32x16xf32>, vector<16x16xf32>, vector<32x16xf32> -> vector<32x16xf32>
    %c16 = arith.constant 16 : index
    %c0_5 = arith.constant 0 : index
    %5 = vector.load %arg1[%c16, %c0_5] : memref<120x128xf32, #tpu.memory_space<vmem>>, vector<16x32xf32>
    %c32_6 = arith.constant 32 : index
    %c0_7 = arith.constant 0 : index
    %6 = vector.load %arg1[%c32_6, %c0_7] : memref<120x128xf32, #tpu.memory_space<vmem>>, vector<1x32xf32>
    %cst_8 = arith.constant dense<0.000000e+00> : vector<32x16xf32>
    %7 = tpu.matmul %1, %4, %cst_8 {dimension_numbers = #tpu.dot_dimension_numbers<[1], [0], [0], [1], [0, 0, 1, 1], [], []>} : vector<32x32xf32>, vector<32x16xf32>, vector<32x16xf32> -> vector<32x16xf32>
    %cst_9 = arith.constant dense<0.000000e+00> : vector<32x32xf32>
    %8 = tpu.matmul %7, %5, %cst_9 {dimension_numbers = #tpu.dot_dimension_numbers<[1], [0], [0], [1], [0, 0, 1, 1], [], []>} : vector<32x16xf32>, vector<16x32xf32>, vector<32x32xf32> -> vector<32x32xf32>
    %9 = vector.broadcast %6 : vector<1x32xf32> to vector<32x32xf32>
    %10 = arith.addf %8, %9 : vector<32x32xf32>
    %11 = arith.mulf %10, %2 : vector<32x32xf32>
    %c40 = arith.constant 40 : index
    %c0_10 = arith.constant 0 : index
    %12 = vector.load %arg1[%c40, %c0_10] : memref<120x128xf32, #tpu.memory_space<vmem>>, vector<32x16xf32>
    %c72 = arith.constant 72 : index
    %c0_11 = arith.constant 0 : index
    %13 = vector.load %arg1[%c72, %c0_11] : memref<120x128xf32, #tpu.memory_space<vmem>>, vector<1x16xf32>
    %cst_12 = arith.constant dense<0.000000e+00> : vector<32x32xf32>
    %14 = tpu.matmul %1, %11, %cst_12 {dimension_numbers = #tpu.dot_dimension_numbers<[1], [0], [0], [1], [0, 0, 1, 1], [], []>} : vector<32x32xf32>, vector<32x32xf32>, vector<32x32xf32> -> vector<32x32xf32>
    %cst_13 = arith.constant dense<0.000000e+00> : vector<32x16xf32>
    %15 = tpu.matmul %14, %12, %cst_13 {dimension_numbers = #tpu.dot_dimension_numbers<[1], [0], [0], [1], [0, 0, 1, 1], [], []>} : vector<32x32xf32>, vector<32x16xf32>, vector<32x16xf32> -> vector<32x16xf32>
    %16 = vector.broadcast %13 : vector<1x16xf32> to vector<32x16xf32>
    %17 = arith.addf %15, %16 : vector<32x16xf32>
    %18 = vector.extract_strided_slice %2 {offsets = [0, 0], sizes = [32, 16], strides = [1, 1]} : vector<32x32xf32> to vector<32x16xf32>
    %19 = arith.mulf %17, %18 : vector<32x16xf32>
    %c80 = arith.constant 80 : index
    %c0_14 = arith.constant 0 : index
    %20 = vector.load %arg1[%c80, %c0_14] : memref<120x128xf32, #tpu.memory_space<vmem>>, vector<16x8xf32>
    %c96 = arith.constant 96 : index
    %c0_15 = arith.constant 0 : index
    %21 = vector.load %arg1[%c96, %c0_15] : memref<120x128xf32, #tpu.memory_space<vmem>>, vector<1x8xf32>
    %cst_16 = arith.constant dense<0.000000e+00> : vector<32x16xf32>
    %22 = tpu.matmul %1, %19, %cst_16 {dimension_numbers = #tpu.dot_dimension_numbers<[1], [0], [0], [1], [0, 0, 1, 1], [], []>} : vector<32x32xf32>, vector<32x16xf32>, vector<32x16xf32> -> vector<32x16xf32>
    %cst_17 = arith.constant dense<0.000000e+00> : vector<32x8xf32>
    %23 = tpu.matmul %22, %20, %cst_17 {dimension_numbers = #tpu.dot_dimension_numbers<[1], [0], [0], [1], [0, 0, 1, 1], [], []>} : vector<32x16xf32>, vector<16x8xf32>, vector<32x8xf32> -> vector<32x8xf32>
    %24 = vector.broadcast %21 : vector<1x8xf32> to vector<32x8xf32>
    %25 = arith.addf %23, %24 : vector<32x8xf32>
    %26 = vector.extract_strided_slice %2 {offsets = [0, 0], sizes = [32, 8], strides = [1, 1]} : vector<32x32xf32> to vector<32x8xf32>
    %27 = arith.mulf %25, %26 : vector<32x8xf32>
    %28 = vector.shape_cast %27 : vector<32x8xf32> to vector<2x16x8xf32>
    %cst_18 = arith.constant dense<0xFF800000> : vector<2x8xf32>
    %29 = vector.multi_reduction <maximumf>, %28, %cst_18 [1] : vector<2x16x8xf32> to vector<2x8xf32>
    %c104 = arith.constant 104 : index
    %c0_19 = arith.constant 0 : index
    %30 = vector.load %arg1[%c104, %c0_19] : memref<120x128xf32, #tpu.memory_space<vmem>>, vector<8x4xf32>
    %c112 = arith.constant 112 : index
    %c0_20 = arith.constant 0 : index
    %31 = vector.load %arg1[%c112, %c0_20] : memref<120x128xf32, #tpu.memory_space<vmem>>, vector<1x4xf32>
    %cst_21 = arith.constant dense<0.000000e+00> : vector<2x4xf32>
    %32 = tpu.matmul %29, %30, %cst_21 {dimension_numbers = #tpu.dot_dimension_numbers<[1], [0], [0], [1], [0, 0, 1, 1], [], []>} : vector<2x8xf32>, vector<8x4xf32>, vector<2x4xf32> -> vector<2x4xf32>
    %33 = vector.broadcast %31 : vector<1x4xf32> to vector<2x4xf32>
    %34 = arith.addf %32, %33 : vector<2x4xf32>
    %cst_22 = arith.constant 0.000000e+00 : f32
    %35 = vector.broadcast %cst_22 : f32 to vector<2x4xf32>
    %36 = arith.maximumf %34, %35 : vector<2x4xf32>
    %c0_23 = arith.constant 0 : index
    %c0_24 = arith.constant 0 : index
    %37 = vector.load %arg2[%c0_23, %c0_24] : memref<2x4xf32, #tpu.memory_space<vmem>>, vector<2x4xf32>
    tpu.vector_store %arg2[%c0_23, %c0_24], %36 {strides = array<i32>} : memref<2x4xf32, #tpu.memory_space<vmem>>, vector<2x4xf32>,
    return
  }
}

</mosaic_0001>

<bundles_post_ra>
// kernel: eq.10
= control target key start
LH: loop header
LB: loop body
LE: loop exit
PB: predicated region body
PF: predicated region fallthrough
CT: control target
= control target key end

     0   :  { %vm7_vm0 = vcmask 130048   ;;  %vm13_vm1 = vcmask 261248   ;;  %s39_s0 = inlined_call_operand.vmem [shape: s32[2,16], index: 0, kind: input, shape index: {}]   ;;  %s40_s1 = inlined_call_operand.vmem [shape: s32[32], index: 1, kind: output, shape index: {}]  }
   0x1   :  { %v4_v0 = vld [vmem:[%s39_s0] sm:$0x3]  ;;  %s22_s0 = smov 16  }
   0x2   :  { %5 = vst [vmem:[#allocation1] sm:$0x3] %v4_v0 }
   0x9   :  { %v10_v1 = vld [vmem:[#allocation1 + $0x1] sm:$0x1]   ;;  %v6_v2 = vld [vmem:[#allocation1] sm:$0x1]  }
   0xa   :  { %11 = vrot.lane.b32.xlu0 %v10_v1, %s22_s0  ;;  %8 = vst.msk [vmem:[#allocation0] sm:$0x1] %vm7_vm0, %v6_v2  }
  0x7c   :  { %v12_v3 = vpop.permute.xlu0 %11  }
  0x7d   :  { %14 = vst.msk [vmem:[#allocation0] sm:$0x1] %vm13_vm1, %v12_v3  }
  0x84   :  { %v18_v4 = vld [vmem:[#allocation0] sm:$0x1] }
  0x85   :  { %20 = vst [vmem:[%s40_s1] sm:$0x1] %v18_v4 }

// kernel: gcn_forward.1
= control target key start
LH: loop header
LB: loop body
LE: loop exit
PB: predicated region body
PF: predicated region fallthrough
CT: control target
= control target key end

     0   :  { %vm26_vm0 = vcmask 130048   ;;  %s1267_s0 = inlined_call_operand.vmem [shape: f32[96,128], index: 0, kind: input, shape index: {}]   ;;  %s1268_s1 = inlined_call_operand.vmem [shape: f32[120,128], index: 1, kind: input, shape index: {}]   ;;  %s1269_s2 = inlined_call_operand.hbm [shape: f32[2,4], index: 2, kind: output, shape index: {}]  }
   0x1   :  { %v24_v0 = vld [vmem:[%s1268_s1] sm:$0xff]  ;;  %v25_v1 = vld [vmem:[%s1268_s1 + $0x8] sm:$0xff] }
   0x2   :  { %v12_v2 = vld [vmem:[%s1267_s0] sm:$0xff]  ;;  %v1012_v3 = vpack.c.bf16 %v25_v1, %v24_v0 }
   0x3   :  { %925 = vmatprep.mubr.msk.f32.mxu0 %vm26_vm0, %v12_v2 }
   0x4   :  { %7 = vsyncpa [#allocation3], 0  ;;  %1013 = vmatprep.subr.bf16.mxu0 %v1012_v3  ;;  %v13_v4 = vld [vmem:[%s1267_s0 + $0x8] sm:$0xff]  ;;  %v14_v5 = vld [vmem:[%s1267_s0 + $0x10] sm:$0xff]  ;;  %vm127_vm1 = vcmask 261120   ;;  %vm1084_vm2 = vmmov 0  }
   0x5   :  { %1015 = vmatpush3.bf16.msra.mxu0 %v1012_v3  ;;  %v15_v6 = vld [vmem:[%s1267_s0 + $0x18] sm:$0xff]  ;;  %v1126_v7 = vld [vmem:[%s1267_s0 + $0x20] sm:$0xff]  ;;  %v124_v8 = vld [vmem:[%s1268_s1 + $0x10] sm:$0xff]  ;;  %vm718_vm3 = vcmask 64512   ;;  %vm745_vm4 = vcmask 1041409   ;;  %s1085_s6 = smov [#allocation2]  }
   0x6   :  { %939 = vmatprep.mubr.msk.f32.mxu1 %vm127_vm1, %v1126_v7  ;;  %v125_v9 = vld [vmem:[%s1268_s1 + $0x18] sm:$0xff]  ;;  %v1139_v17 = vld [vmem:[%s1267_s0 + $0x28] sm:$0xff]  ;;  %v1144_v18 = vld [vmem:[%s1267_s0 + $0x30] sm:$0xff]  ;;  %s828_s7 = sshll.u32 %s1085_s6, 4  ;;  %vm820_vm5 = vcmask 25600   ;;  %s829_s7 = int_to_ptr.vmem [resolvable:$true] %s828_s7 }
   0x7   :  { %v1024_v10 = vpack.c.bf16 %v125_v9, %v124_v8  ;;  %v1153_v19 = vld [vmem:[%s1267_s0 + $0x38] sm:$0xff]  ;;  %v330_v24 = vld [vmem:[%s1268_s1 + $0x28] sm:$0xff]  ;;  %v331_v25 = vld [vmem:[%s1268_s1 + $0x30] sm:$0xff]  ;;  %s1059_s8 = scalar_lea.vmem %s829_s7, 32  ;;  %p1064_p1 = scmp.lt.s32.totalorder %s829_s7, %s829_s7 }
   0x8   :  { %926 = vmatmul.mubr.msk.f32.vlgmr.msra.gmra.mrb[0].mxu0 %vm26_vm0, %v13_v4  ;;  %v332_v26 = vld [vmem:[%s1268_s1 + $0x38] sm:$0xff]  ;;  %v1036_v27 = vpack.c.bf16 %v331_v25, %v330_v24  ;;  %v333_v28 = vld [vmem:[%s1268_s1 + $0x40] sm:$0xff]  ;;  %v1181_v31 = vld [vmem:[%s1267_s0 + $0x48] sm:$0xff]  ;;  %p1060_p0 = scmp.ne.s32.totalorder %s829_s7, %s1059_s8  ;;  %p1065_p2 = scmp.lt.s32.totalorder %s1059_s8, %s1059_s8 }
   0x9   :  { %928 = vmatprep.mubr.msk.f32.mxu0 %vm26_vm0, %v14_v5  ;;  %1025 = vmatprep.subr.bf16.mxu0 %v1024_v10  ;;  %v1040_v29 = vpack.c.bf16 %v333_v28, %v332_v26  ;;  %v844_v30 = vld [vmem:[%s1268_s1 + $0x20] ss:$0 sm:$0xff]  ;;  %v1193_v39 = vld [vmem:[%s1267_s0 + $0x58] sm:$0xff]  ;;  %v1198_v42 = vld [vmem:[%s1267_s0 + $0x50] sm:$0xff] }
   0xa   :  { %1027 = vmatpush3.bf16.msra.mxu0 %v1024_v10  ;;  %v1186_v34 = vld [vmem:[%s1267_s0 + $0x40] sm:$0xff]  ;;  %v525_v53 = vld [vmem:[%s1268_s1 + $0x50] sm:$0xff]  ;;  %v526_v54 = vld [vmem:[%s1268_s1 + $0x58] sm:$0xff]  ;;  %p1066_p3 = por %p1065_p2, %p1064_p1 }
   0xb   :  { %1037 = vmatprep.subr.bf16.mxu0 %v1036_v27  ;;  %v1052_v55 = vpack.c.bf16 %v526_v54, %v525_v53  ;;  %v853_v56 = vld [vmem:[%s1268_s1 + $0x48] ss:$0 sm:$0xff] }
   0xc   :  { %929 = vmatmul.mubr.msk.f32.gmra.mrb[2].mxu0 %vm26_vm0, %v15_v6  ;;  %p1067_p4 = pnand %p1066_p3, %p1060_p0 }
  0xdb   :  { %v927_v11 = vpop.f32.mrb[0].mxu0 }
  0xdc   :  { %v105_v12 = vpop.f32.mrb[1].mxu0 }
  0xdd   :  { %v1016_v13 = vpack.c.bf16 %v927_v11, %v105_v12  ;;  %v737_v11 = vld [vmem:[%s1268_s1 + $0x68] sm:$0xff]  ;;  %v1083_v12 = vmov 0.0  }
  0xdf   :  { %v930_v14 = vpop.f32.mrb[2].mxu0  ;;  %1017 = vmatprep.subr.bf16.mxu1 %v1016_v13 }
  0xe0   :  { %v115_v15 = vpop.f32.mrb[3].mxu0  ;;  %1019 = vmatpush3.bf16.msra.mxu1 %v1016_v13  ;;  %v862_v13 = vld [vmem:[%s1268_s1 + $0x60] ss:$0 sm:$0xff] }
  0xe1   :  { %v1020_v16 = vpack.c.bf16 %v930_v14, %v115_v15 }
  0xe3   :  { %1021 = vmatprep.subr.bf16.mxu1 %v1020_v16 }
  0xe4   :  { %1023 = vmatpush3.bf16.msra.mxu1 %v1020_v16 }
  0xe7   :  { %940 = vmatmul.mubr.msk.f32.vlgmr.msra.gmra.mrb[0].mxu1 %vm127_vm1, %v1139_v17 }
  0xe8   :  { %942 = vmatprep.mubr.msk.f32.mxu1 %vm127_vm1, %v1144_v18 }
  0xeb   :  { %943 = vmatmul.mubr.msk.f32.gmra.mrb[2].mxu1 %vm127_vm1, %v1153_v19 }
  0xec   :  { %963 = vmatprep.mubr.msk.f32.mxu1 %vm127_vm1, %v1126_v7 }
 0x1ba   :  { %v941_v20 = vpop.f32.mrb[0].mxu1 }
 0x1bb   :  { %v206_v21 = vpop.f32.mrb[1].mxu1 }
 0x1bc   :  { %949 = vmatprep.mubr.msk.f32.mxu0 %vm26_vm0, %v206_v21 }
 0x1bd   :  { %950 = vmatmul.mubr.msk.f32.vlgmr.msra.gmra.mrb[4].mxu0 %vm26_vm0, %v941_v20 }
 0x1be   :  { %v944_v22 = vpop.f32.mrb[2].mxu1  ;;  %1039 = vmatpush3.bf16.msra.mxu0 %v1036_v27 }
 0x1bf   :  { %v216_v23 = vpop.f32.mrb[3].mxu1  ;;  %1041 = vmatprep.subr.bf16.mxu0 %v1040_v29 }
 0x1c0   :  { %952 = vmatprep.mubr.msk.f32.mxu0 %vm26_vm0, %v216_v23 }
 0x1c1   :  { %953 = vmatmul.mubr.msk.f32.gmra.mrb[6].mxu0 %vm26_vm0, %v944_v22 }
 0x1c2   :  { %1043 = vmatpush3.bf16.msra.mxu0 %v1040_v29 }
 0x1c3   :  { %1053 = vmatprep.subr.bf16.mxu0 %v1052_v55 }
 0x290   :  { %v951_v32 = vpop.f32.mrb[4].mxu0 }
 0x291   :  { %v313_v33 = vadd.f32 %v951_v32, %v844_v30  ;;  %v307_v35 = vpop.f32.mrb[5].mxu0 }
 0x292   :  { %v308_v36 = vadd.f32 %v844_v30, %v307_v35 }
 0x293   :  { %v327_v37 = vmul.f32 %v313_v33, %v1181_v31 }
 0x294   :  { %v326_v38 = vmul.f32 %v308_v36, %v1186_v34  ;;  %v954_v40 = vpop.f32.mrb[6].mxu0 }
 0x295   :  { %v323_v41 = vadd.f32 %v954_v40, %v844_v30  ;;  %v317_v43 = vpop.f32.mrb[7].mxu0 }
 0x296   :  { %v318_v44 = vadd.f32 %v844_v30, %v317_v43  ;;  %v1028_v45 = vpack.c.bf16 %v327_v37, %v326_v38 }
 0x297   :  { %v329_v46 = vmul.f32 %v323_v41, %v1193_v39 }
 0x298   :  { %v328_v47 = vmul.f32 %v318_v44, %v1198_v42  ;;  %1029 = vmatprep.subr.bf16.mxu1 %v1028_v45 }
 0x299   :  { %1031 = vmatpush3.bf16.msra.mxu1 %v1028_v45 }
 0x29a   :  { %v1032_v48 = vpack.c.bf16 %v329_v46, %v328_v47 }
 0x29c   :  { %1033 = vmatprep.subr.bf16.mxu1 %v1032_v48 }
 0x29d   :  { %1035 = vmatpush3.bf16.msra.mxu1 %v1032_v48 }
 0x2a0   :  { %964 = vmatmul.mubr.msk.f32.vlgmr.msra.gmra.mrb[4].mxu1 %vm127_vm1, %v1139_v17 }
 0x2a1   :  { %966 = vmatprep.mubr.msk.f32.mxu1 %vm127_vm1, %v1144_v18 }
 0x2a4   :  { %967 = vmatmul.mubr.msk.f32.gmra.mrb[6].mxu1 %vm127_vm1, %v1153_v19 }
 0x2a5   :  { %991 = vmatprep.mubr.msk.f32.mxu1 %vm127_vm1, %v1126_v7 }
 0x373   :  { %v965_v49 = vpop.f32.mrb[4].mxu1 }
 0x374   :  { %v401_v50 = vpop.f32.mrb[5].mxu1 }
 0x375   :  { %977 = vmatprep.mubr.msk.f32.mxu0 %vm127_vm1, %v401_v50 }
 0x376   :  { %978 = vmatmul.mubr.msk.f32.vlgmr.msra.gmra.mrb[8].mxu0 %vm127_vm1, %v965_v49 }
 0x377   :  { %v968_v51 = vpop.f32.mrb[6].mxu1  ;;  %1055 = vmatpush3.bf16.msra.mxu0 %v1052_v55 }
 0x378   :  { %v411_v52 = vpop.f32.mrb[7].mxu1 }
 0x379   :  { %980 = vmatprep.mubr.msk.f32.mxu0 %vm127_vm1, %v411_v52 }
 0x37a   :  { %981 = vmatmul.mubr.msk.f32.gmra.mrb[10].mxu0 %vm127_vm1, %v968_v51 }
 0x449   :  { %v979_v57 = vpop.f32.mrb[8].mxu0 }
 0x44a   :  { %v508_v58 = vadd.f32 %v979_v57, %v853_v56  ;;  %v502_v59 = vpop.f32.mrb[9].mxu0 }
 0x44b   :  { %v503_v60 = vadd.f32 %v853_v56, %v502_v59 }
 0x44c   :  { %v522_v61 = vmul.f32 %v508_v58, %v1181_v31 }
 0x44d   :  { %v521_v62 = vmul.f32 %v503_v60, %v1186_v34  ;;  %v982_v63 = vpop.f32.mrb[10].mxu0 }
 0x44e   :  { %v518_v0 = vadd.f32 %v982_v63, %v853_v56  ;;  %v512_v1 = vpop.f32.mrb[11].mxu0 }
 0x44f   :  { %v513_v2 = vadd.f32 %v853_v56, %v512_v1  ;;  %v1044_v3 = vpack.c.bf16 %v522_v61, %v521_v62 }
 0x450   :  { %v524_v4 = vmul.f32 %v518_v0, %v1193_v39 }
 0x451   :  { %v523_v5 = vmul.f32 %v513_v2, %v1198_v42  ;;  %1045 = vmatprep.subr.bf16.mxu1 %v1044_v3 }
 0x452   :  { %1047 = vmatpush3.bf16.msra.mxu1 %v1044_v3 }
 0x453   :  { %v1048_v6 = vpack.c.bf16 %v524_v4, %v523_v5 }
 0x455   :  { %1049 = vmatprep.subr.bf16.mxu1 %v1048_v6 }
 0x456   :  { %1051 = vmatpush3.bf16.msra.mxu1 %v1048_v6 }
 0x457   :  { %1007 = vmatprep.subr.mxu1 %v1083_v12 }
 0x459   :  { %992 = vmatmul.mubr.msk.f32.vlgmr.msra.gmra.mrb[8].mxu1 %vm127_vm1, %v1139_v17 }
 0x45a   :  { %994 = vmatprep.mubr.msk.f32.mxu1 %vm127_vm1, %v1144_v18  ;;  %1008 = vmatpush3.msra.mxu1 %v737_v11 }
 0x45d   :  { %995 = vmatmul.mubr.msk.f32.gmra.mrb[10].mxu1 %vm127_vm1, %v1153_v19 }
 0x45e   :  { %1009 = vmatprep.mubr.msk.f32.mxu1 %vm1084_vm2, %v1083_v12 }
 0x52c   :  { %v993_v7 = vpop.f32.mrb[8].mxu1 }
 0x52d   :  { %v594_v8 = vpop.f32.mrb[9].mxu1 }
 0x52e   :  { %1001 = vmatprep.mubr.msk.f32.mxu0 %vm26_vm0, %v594_v8 }
 0x52f   :  { %1002 = vmatmul.mubr.msk.f32.vlgmr.msra.gmra.mrb[12].mxu0 %vm26_vm0, %v993_v7 }
 0x530   :  { %v996_v9 = vpop.f32.mrb[10].mxu1 }
 0x531   :  { %v604_v10 = vpop.f32.mrb[11].mxu1 }
 0x532   :  { %1004 = vmatprep.mubr.msk.f32.mxu0 %vm26_vm0, %v604_v10 }
 0x533   :  { %1005 = vmatmul.mubr.msk.f32.gmra.mrb[14].mxu0 %vm26_vm0, %v996_v9 }
 0x602   :  { %v1003_v14 = vpop.f32.mrb[12].mxu0 }
 0x603   :  { %v701_v15 = vadd.f32 %v1003_v14, %v862_v13  ;;  %v695_v16 = vpop.f32.mrb[13].mxu0 }
 0x604   :  { %v696_v17 = vadd.f32 %v862_v13, %v695_v16 }
 0x605   :  { %v715_v18 = vmul.f32 %v701_v15, %v1181_v31 }
 0x606   :  { %v714_v19 = vmul.f32 %v696_v17, %v1186_v34  ;;  %v1006_v20 = vpop.f32.mrb[14].mxu0 }
 0x607   :  { %v720_v21 = vsel %vm718_vm3, %v715_v18, -inf  ;;  %v711_v22 = vadd.f32 %v1006_v20, %v862_v13  ;;  %v705_v23 = vpop.f32.mrb[15].mxu0 }
 0x608   :  { %v719_v24 = vsel %vm718_vm3, %v714_v19, -inf  ;;  %v706_v25 = vadd.f32 %v862_v13, %v705_v23 }
 0x609   :  { %v721_v26 = vmax.f32 %v719_v24, %v720_v21  ;;  %v717_v27 = vmul.f32 %v711_v22, %v1193_v39 }
 0x60a   :  { %v716_v28 = vmul.f32 %v706_v25, %v1198_v42  ;;  %v867_v42 = vld [vmem:[%s1268_s1 + $0x70] ss:$0 sm:$0xff] }
 0x60b   :  { %v722_v29 = vrot.slane %v721_v26, 4  ;;  %v729_v30 = vsel %vm718_vm3, %v717_v27, -inf }
 0x60c   :  { %v728_v31 = vsel %vm718_vm3, %v716_v28, -inf }
 0x60d   :  { %v723_v32 = vmax.f32 %v721_v26, %v722_v29  ;;  %v730_v33 = vmax.f32 %v728_v31, %v729_v30 }
 0x60f   :  { %v724_v34 = vrot.slane %v723_v32, 2  ;;  %v731_v35 = vrot.slane %v730_v33, 4 }
 0x611   :  { %v725_v36 = vmax.f32 %v723_v32, %v724_v34  ;;  %v732_v37 = vmax.f32 %v730_v33, %v731_v35 }
 0x613   :  { %v733_v38 = vrot.slane %v732_v37, 2  ;;  %v726_v40 = vrot.slane %v725_v36, 1 }
 0x615   :  { %v734_v41 = vmax.f32 %v732_v37, %v733_v38  ;;  %v727_v44 = vmax.f32 %v725_v36, %v726_v40 }
 0x617   :  { %v735_v43 = vrot.slane %v734_v41, 1 }
 0x619   :  { %v736_v39 = vmax.f32 %v734_v41, %v735_v43 }
 0x61b   :  { %v746_v45 = vsel %vm745_vm4, %v736_v39, %v727_v44 }
 0x61c   :  { %1010 = vmatmul.mubr.msk.f32.vlgmr.msra.gmra.mrb[12].mxu1 %vm718_vm3, %v746_v45 }
 0x6ef   :  { %v815_v46 = vpop.f32.mrb[12].mxu1 }
 0x6f0   :  { %v816_v47 = vadd.f32 %v867_v42, %v815_v46  ;;  %v1011_v48 = vpop.f32.mrb[13].mxu1 }
 0x6f2   :  { %v819_v49 = vmax.f32 %v816_v47, 0.0 }
 0x6f4   :  { %821 = vst.msk [vmem:[#allocation2] sm:$0x3] %vm820_vm5, %v819_v49 }
 0x6f5   :  { %1070 = shalt.err (!%p1067_p4)
}
 0x6f6   :  { %s1071_s1 = scalar_lea.hbm %s1269_s2, 32 }
 0x6f7   :  { %p1072_p5 = scmp.ne.s32.totalorder %s1269_s2, %s1071_s1  ;;  %p1075_p6 = scmp.lt.u32.totalorder %s1071_s1, %s1269_s2 }
 0x6f9   :  { %p1077_p7 = pnand %p1075_p6, %p1072_p5 }
 0x6fb   :  { %1080 = shalt.err (!%p1077_p7)
}
 0x6fc   :  { %831 = dma.vmem_to_hbm [thread:$0]  %s829_s7, 32, %s1269_s2, [#allocation3]  }
 0x6fd   :  { %1081 = dma.done.wait [#allocation3], 32  }
 0x6fe   :  { %1082 = vsyncadd [#allocation3], 4294967264 }
 0x6ff   :  { %835 = vsyncpa [#allocation3], 1 }

</bundles_post_ra>
